<compile_context>
chip_gen: v5e
topology: v5e:2x2
jax: 0.10.0
libtpu: 0.0.40
codegen_flags: <defaults>
</compile_context>

<pallas_src>
import functools

import jax
import jax.numpy as jnp
from jax.experimental import pallas as pl
from jax.experimental.pallas import tpu as pltpu


SMOOTHING_RATIO = 0.1
_MAX_TILE_ROWS = 4096          # keeps lane-padded (TN, 1) buffers / scratch small


def _vmem_budget_bytes():
    """Scoped-VMEM budget: half of physical VMEM, clamped to [16, 96] MiB."""
    phys = 64 * 1024 * 1024                      # conservative fallback (v7x per-core)
    try:
        info = pltpu.get_tpu_info()
        phys = int(getattr(info, "vmem_capacity_bytes", phys))
    except Exception:
        pass
    return max(16 * 1024 * 1024, min(phys // 2, 96 * 1024 * 1024))


def _smooth_cls_loss_kernel(pred_ref, target_ref, out_ref, acc_ref, *,
                            n_total, tile_rows, tiles_per_core, eps, needs_mask):
    # pred_ref:   (TN, C) native float dtype, VMEM tile (double-buffered)
    # target_ref: (TN, 1) int32, VMEM tile
    # out_ref:    (8, 128) f32 block, one per parallel slice (TensorCore on v7x)
    # acc_ref:    (TN, 1) f32 scratch -> per-core vector accumulator
    p = pl.program_id(0)           # parallel slice index
    i = pl.program_id(1)           # serial row-tile index within the slice

    @pl.when(i == 0)
    def _init():
        acc_ref[...] = jnp.zeros_like(acc_ref)

    x = pred_ref[...]
    # Keep bf16/f16 native (bf16 VALUs on v6e/v7x); upcast anything else to f32.
    if x.dtype.name not in ("float32", "bfloat16", "float16"):
        x = x.astype(jnp.float32)
    tgt = target_ref[...]                                     # (TN, 1) int32
    tn, c = x.shape

    on = jnp.asarray(1.0 - eps, dtype=x.dtype)                # target-class weight
    off = jnp.asarray(eps / (c - 1), dtype=x.dtype)           # other-class weight

    # Fused smoothing: one select, one multiply, ONE lane (XLU) reduction.
    cols = jax.lax.broadcasted_iota(jnp.int32, (tn, c), dimension=1)
    w = jnp.where(cols == tgt, on, off)                       # (TN, C)
    per_row = jnp.sum((w * x).astype(jnp.float32),
                      axis=1, keepdims=True)                  # (TN, 1) f32

    if needs_mask:
        g = p * tiles_per_core + i                            # global row-tile index
        row0 = g * tile_rows

        @pl.when(row0 + tile_rows <= n_total)                 # full tile: fast path
        def _full():
            acc_ref[...] += per_row

        @pl.when(row0 + tile_rows > n_total)                  # padded / surplus tail tile
        def _tail():
            rows = row0 + jax.lax.broadcasted_iota(jnp.int32, (tn, 1), 0)
            # Must be a select (not a multiply): garbage/NaN rows must not propagate.
            acc_ref[...] += jnp.where(rows < n_total, per_row, 0.0)
    else:
        acc_ref[...] += per_row

    @pl.when(i == tiles_per_core - 1)
    def _finalize():
        total = jnp.sum(acc_ref[...])                         # single reduce per core
        out_ref[...] = jnp.zeros(out_ref.shape, jnp.float32) + total


def smooth_cls_loss(pred, target, smoothing_ratio=SMOOTHING_RATIO,
                    max_rows_per_tile=None):
    """pred: (N, C) float (any float dtype), target: (N,) int -> scalar f32 loss."""
    n, c = pred.shape
    assert n >= 1 and c > 1, "label smoothing needs C >= 2 (eps / (C - 1))"
    target2d = target.astype(jnp.int32).reshape(n, 1)
    dtype_bytes = pred.dtype.itemsize

    # --- adaptive row tile -------------------------------------------------
    budget = _vmem_budget_bytes()
    tile_target_bytes = budget // 8                 # double-buffered pred ~= budget/4
    floor_rows = max(8, 32 // max(dtype_bytes, 1))  # 8 f32 / 16 bf16 / 32 int8
    tn = tile_target_bytes // max(c * dtype_bytes, 1)
    tn = max(floor_rows, min(tn, _MAX_TILE_ROWS))
    tn = (tn // floor_rows) * floor_rows
    if max_rows_per_tile is not None:
        tn = min(tn, int(max_rows_per_tile))
    if n <= tn:
        tn = n                                      # single row tile (full-dim block)
    elif tn % 8 != 0:
        tn = max(8, (tn // 8) * 8)                  # sublane constraint

    total_tiles = pl.cdiv(n, tn)
    n_splits = 2 if total_tiles >= 2 else 1         # v7x: one chunk per TensorCore
    tiles_per_core = pl.cdiv(total_tiles, n_splits)
    needs_mask = (n % tn != 0) or (total_tiles % n_splits != 0)

    # TODO(synk): for vocab-scale C (a single (tn, C) tile cannot fit VMEM even at
    # the minimum row tile) add a second "arbitrary" grid axis over C with
    # lane-dense (tn, TC) blocks and an f32 row-partial scratch.
    pred_tile_bytes = tn * c * dtype_bytes
    aux_bytes = 3 * tn * 512 + (2 << 20)            # lane-padded target bufs + acc + slack
    vmem_limit = max(budget, 2 * pred_tile_bytes + aux_bytes)

    def row_block(p, i):
        # Surplus iterations of an uneven split re-read (and fully mask) the last tile,
        # keeping every DMA in bounds.
        return (jnp.minimum(p * tiles_per_core + i, total_tiles - 1), 0)

    kernel = functools.partial(
        _smooth_cls_loss_kernel,
        n_total=n, tile_rows=tn, tiles_per_core=tiles_per_core,
        eps=float(smoothing_ratio), needs_mask=needs_mask)

    out = pl.pallas_call(
        kernel,
        out_shape=jax.ShapeDtypeStruct((n_splits * 8, 128), jnp.float32),
        grid_spec=pltpu.PrefetchScalarGridSpec(
            num_scalar_prefetch=0,
            grid=(n_splits, tiles_per_core),
            in_specs=[
                pl.BlockSpec((tn, c), row_block),   # pred tile (native dtype)
                pl.BlockSpec((tn, 1), row_block),   # target tile
            ],
            out_specs=pl.BlockSpec((8, 128), lambda p, i: (p, 0)),
            scratch_shapes=[pltpu.VMEM((tn, 1), jnp.float32)],
        ),
        compiler_params=pltpu.CompilerParams(
            dimension_semantics=("parallel", "arbitrary"),
            vmem_limit_bytes=int(vmem_limit),
        ),
    )(pred, target2d)

    partials = out[0::8, 0]                         # one partial sum per core chunk
    return -jnp.sum(partials) / jnp.float32(n)


def _reference(pred, target, eps=SMOOTHING_RATIO):
    n_class = pred.shape[1]
    one_hot = jax.nn.one_hot(target, n_class, dtype=jnp.float32)
    smoothed = one_hot * (1.0 - eps) + (1.0 - one_hot) * eps / (n_class - 1)
    return -jnp.mean(jnp.sum(smoothed * pred.astype(jnp.float32), axis=1))


if __name__ == "__main__":
    key = jax.random.PRNGKey(0)
    k1, k2, k3, k4 = jax.random.split(key, 4)

    # Case 1: small single-tile problem (N=8 rows, C=16 classes).
    batch, n_class = 8, 16
    logits = jax.random.normal(k1, (batch, n_class), dtype=jnp.float32)
    pred = jax.nn.log_softmax(logits, axis=-1)
    target = jax.random.randint(k2, (batch,), 0, n_class, dtype=jnp.int32)

    loss = smooth_cls_loss(pred, target)
    jax.block_until_ready(loss)
    ref = _reference(pred, target)
    assert jnp.allclose(loss, ref, atol=1e-5, rtol=1e-5), (loss, ref)

    # Case 2: forces a (2-parallel x 2-serial) grid with a clamped surplus tile
    # and a partially filled last tile (N=20, row tile 8).
    batch2, n_class2 = 20, 16
    logits2 = jax.random.normal(k3, (batch2, n_class2), dtype=jnp.float32)
    pred2 = jax.nn.log_softmax(logits2, axis=-1)
    target2 = jax.random.randint(k4, (batch2,), 0, n_class2, dtype=jnp.int32)

    loss2 = smooth_cls_loss(pred2, target2, max_rows_per_tile=8)
    jax.block_until_ready(loss2)
    ref2 = _reference(pred2, target2)
    assert jnp.allclose(loss2, ref2, atol=1e-5, rtol=1e-5), (loss2, ref2)

    print("KERNEL_OK")
</pallas_src>

<mosaic_0001>
module attributes {stable_mosaic.version = 11 : i64} {
  func.func @_smooth_cls_loss_kernel(%arg0: i32, %arg1: i32, %arg2: memref<8x16xf32, #tpu.memory_space<vmem>>, %arg3: memref<8x1xi32, #tpu.memory_space<vmem>>, %arg4: memref<8x128xf32, #tpu.memory_space<vmem>>, %arg5: memref<8x1xf32, #tpu.memory_space<vmem>>) attributes {dimension_semantics = [#tpu.dimension_semantics<parallel>, #tpu.dimension_semantics<arbitrary>], iteration_bounds = array<i64: 1, 1>, scalar_prefetch = 0 : i64, scratch_operands = 1 : i64, tpu.core_type = #tpu.core_type<tc>, window_params = [{transform_indices = @transform_0, window_bounds = array<i64: 8, 16>}, {transform_indices = @transform_1, window_bounds = array<i64: 8, 1>}, {transform_indices = @transform_2, window_bounds = array<i64: 8, 128>}]} {
    %c0_i32 = arith.constant 0 : i32
    %0 = arith.cmpi eq, %arg1, %c0_i32 : i32
    %1 = arith.extui %0 : i1 to i32
    %c0_i32_0 = arith.constant 0 : i32
    %2 = arith.cmpi ne, %1, %c0_i32_0 : i32
    scf.if %2 {
      %cst_12 = arith.constant 0.000000e+00 : f32
      %20 = vector.broadcast %cst_12 : f32 to vector<8x1xf32>
      %c0_13 = arith.constant 0 : index
      %c0_14 = arith.constant 0 : index
      %21 = vector.load %arg5[%c0_13, %c0_14] : memref<8x1xf32, #tpu.memory_space<vmem>>, vector<8x1xf32>
      tpu.vector_store %arg5[%c0_13, %c0_14], %20 {strides = array<i32>} : memref<8x1xf32, #tpu.memory_space<vmem>>, vector<8x1xf32>,
    } else {
    }
    %c0 = arith.constant 0 : index
    %c0_1 = arith.constant 0 : index
    %3 = vector.load %arg2[%c0, %c0_1] : memref<8x16xf32, #tpu.memory_space<vmem>>, vector<8x16xf32>
    %c0_2 = arith.constant 0 : index
    %c0_3 = arith.constant 0 : index
    %4 = vector.load %arg3[%c0_2, %c0_3] : memref<8x1xi32, #tpu.memory_space<vmem>>, vector<8x1xi32>
    %5 = tpu.iota {dimensions = array<i32: 1>} : vector<8x16xi32>
    %6 = vector.broadcast %4 : vector<8x1xi32> to vector<8x16xi32>
    %7 = arith.cmpi eq, %5, %6 : vector<8x16xi32>
    %cst = arith.constant 0.899999976 : f32
    %cst_4 = arith.constant 0.00666666683 : f32
    %8 = vector.broadcast %cst : f32 to vector<8x16xf32>
    %9 = vector.broadcast %cst_4 : f32 to vector<8x16xf32>
    %10 = arith.select %7, %8, %9 : vector<8x16xi1>, vector<8x16xf32>
    %11 = arith.mulf %10, %3 : vector<8x16xf32>
    %cst_5 = arith.constant dense<0.000000e+00> : vector<8xf32>
    %12 = vector.multi_reduction <add>, %11, %cst_5 [1] : vector<8x16xf32> to vector<8xf32>
    %13 = vector.shape_cast %12 : vector<8xf32> to vector<8x1xf32>
    %c0_6 = arith.constant 0 : index
    %c0_7 = arith.constant 0 : index
    %14 = vector.load %arg5[%c0_6, %c0_7] : memref<8x1xf32, #tpu.memory_space<vmem>>, vector<8x1xf32>
    %15 = arith.addf %14, %13 : vector<8x1xf32>
    %c0_8 = arith.constant 0 : index
    %c0_9 = arith.constant 0 : index
    %16 = vector.load %arg5[%c0_8, %c0_9] : memref<8x1xf32, #tpu.memory_space<vmem>>, vector<8x1xf32>
    tpu.vector_store %arg5[%c0_8, %c0_9], %15 {strides = array<i32>} : memref<8x1xf32, #tpu.memory_space<vmem>>, vector<8x1xf32>,
    %c0_i32_10 = arith.constant 0 : i32
    %17 = arith.cmpi eq, %arg1, %c0_i32_10 : i32
    %18 = arith.extui %17 : i1 to i32
    %c0_i32_11 = arith.constant 0 : i32
    %19 = arith.cmpi ne, %18, %c0_i32_11 : i32
    scf.if %19 {
      %c0_12 = arith.constant 0 : index
      %c0_13 = arith.constant 0 : index
      %20 = vector.load %arg5[%c0_12, %c0_13] : memref<8x1xf32, #tpu.memory_space<vmem>>, vector<8x1xf32>
      %21 = vector.shape_cast %20 : vector<8x1xf32> to vector<1x8x1xf32>
      %cst_14 = arith.constant dense<0.000000e+00> : vector<1xf32>
      %22 = vector.multi_reduction <add>, %21, %cst_14 [1, 2] : vector<1x8x1xf32> to vector<1xf32>
      %23 = vector.shape_cast %22 : vector<1xf32> to vector<1x1x1xf32>
      %24 = vector.extract %23[0, 0, 0] : f32 from vector<1x1x1xf32>
      %cst_15 = arith.constant 0.000000e+00 : f32
      %25 = vector.broadcast %cst_15 : f32 to vector<8x128xf32>
      %26 = vector.broadcast %24 : f32 to vector<8x128xf32>
      %27 = arith.addf %25, %26 : vector<8x128xf32>
      %c0_16 = arith.constant 0 : index
      %c0_17 = arith.constant 0 : index
      %28 = vector.load %arg4[%c0_16, %c0_17] : memref<8x128xf32, #tpu.memory_space<vmem>>, vector<8x128xf32>
      tpu.vector_store %arg4[%c0_16, %c0_17], %27 {strides = array<i32>} : memref<8x128xf32, #tpu.memory_space<vmem>>, vector<8x128xf32>,
    } else {
    }
    return
  }
  func.func @transform_0(%arg0: i32, %arg1: i32) -> (i32, i32) {
    %c1_i32 = arith.constant 1 : i32
    %0 = arith.muli %arg0, %c1_i32 : i32
    %1 = arith.addi %0, %arg1 : i32
    %c0_i32 = arith.constant 0 : i32
    %2 = arith.minsi %1, %c0_i32 : i32
    %c0_i32_0 = arith.constant 0 : i32
    %c0_i32_1 = arith.constant 0 : i32
    return %2, %c0_i32_0 : i32, i32
  }
  func.func @transform_1(%arg0: i32, %arg1: i32) -> (i32, i32) {
    %c1_i32 = arith.constant 1 : i32
    %0 = arith.muli %arg0, %c1_i32 : i32
    %1 = arith.addi %0, %arg1 : i32
    %c0_i32 = arith.constant 0 : i32
    %2 = arith.minsi %1, %c0_i32 : i32
    %c0_i32_0 = arith.constant 0 : i32
    %c0_i32_1 = arith.constant 0 : i32
    return %2, %c0_i32_0 : i32, i32
  }
  func.func @transform_2(%arg0: i32, %arg1: i32) -> (i32, i32) {
    %c0_i32 = arith.constant 0 : i32
    %c0_i32_0 = arith.constant 0 : i32
    return %arg0, %c0_i32 : i32, i32
  }
}

</mosaic_0001>

<bundles_post_ra>
// kernel: tpu_custom_call.1
= control target key start
LH: loop header
LB: loop body
LE: loop exit
PB: predicated region body
PF: predicated region fallthrough
CT: control target
= control target key end

     0   :  { %s196_s0 = inlined_call_operand.vmem [shape: f32[8,16], index: 0, kind: input, shape index: {}]   ;;  %s197_s1 = inlined_call_operand.vmem [shape: s32[8,1], index: 1, kind: input, shape index: {}]   ;;  %s198_s2 = inlined_call_operand.hbm [shape: f32[8,128], index: 2, kind: output, shape index: {}]  }
   0x1   :  { %v73_v0 = vld [vmem:[%s197_s1] sm:$0xff] }
   0x2   :  { %7 = vsyncpa [#allocation4], 0  ;;  %v168_v1 = vmov 0   ;;  %v74_v2 = vlaneseq  ;;  %v72_v5 = vld [vmem:[%s196_s0] sm:$0xff]  ;;  %v169_v6 = vmov 0.006666667  }
   0x3   :  { %141 = vset.pattern.permute.xlu0 %v168_v1  ;;  %vm82_vm1 = vcmask 130048   ;;  %vm70_vm2 = vcmask 7168   ;;  %v170_v10 = vmov 0.0   ;;  %s171_s0 = smov [#allocation3]   ;;  %s114_s15 = sshll.u32 %s198_s2, 4  ;;  %s115_s15 = int_to_ptr.hbm [resolvable:$true] %s114_s15 }
   0x4   :  { %77 = vperm.xlu0 %141, %v73_v0   ;;  %v75_v3 = vand.u32 127, %v74_v2  ;;  %71 = vst.msk [vmem:[#allocation2] sm:$0xff] %vm70_vm2, %v170_v10  ;;  %s112_s1 = sshll.u32 %s171_s0, 4  ;;  %s113_s1 = int_to_ptr.vmem [resolvable:$true] %s112_s1 }
   0xb   :  { %v86_v11 = vld [vmem:[#allocation2] sm:$0xff] }
  0x76   :  { %v78_v4 = vpop.permute.xlu0 %77 }
  0x77   :  { %vm79_vm0 = vcmp.eq.s32.totalorder %v75_v3, %v78_v4 }
  0x78   :  { %v80_v7 = vsel %vm79_vm0, 0.9, %v169_v6 }
  0x79   :  { %v81_v8 = vmul.f32 %v80_v7, %v72_v5 }
  0x7b   :  { %v83_v9 = vsel %vm82_vm1, %v81_v8, 0.0 }
  0x7c   :  { %84 = vadd.xlane.f32.xlu0 %v83_v9 }
  0xef   :  { %v85_v12 = vpop.xlane.xlu0 %84 }
  0xf0   :  { %v87_v13 = vadd.f32 %v86_v11, %v85_v12 }
  0xf2   :  { %89 = vst.msk [vmem:[#allocation2] sm:$0xff] %vm70_vm2, %v87_v13 }
  0xf9   :  { %v93_v14 = vld [vmem:[#allocation2] sm:$0xff] }
  0xfa   :  { %v94_v15 = vsel %vm70_vm2, %v93_v14, 0.0 }
  0xfb   :  { %95 = vadd.xlane.f32.xlu1 %v94_v15 }
 0x16e   :  { %v96_v16 = vpop.xlane.xlu1 %95 }
 0x16f   :  { %v97_v17 = vrot.slane %v96_v16, 4 }
 0x171   :  { %v98_v18 = vadd.f32 %v97_v17, %v96_v16 }
 0x173   :  { %v99_v19 = vrot.slane %v98_v18, 2 }
 0x175   :  { %v100_v20 = vadd.f32 %v99_v19, %v98_v18 }
 0x177   :  { %v101_v21 = vrot.slane %v100_v20, 1 }
 0x179   :  { %v102_v22 = vadd.f32 %v101_v21, %v100_v20 }
 0x17b   :  { %135 = vpush %v102_v22 }
 0x1ac   :  { %s136_s16 = spop %135 }
 0x1ad   :  { %v104_v23 = vstv %s136_s16 }
 0x1ae   :  { %106 = vst [vmem:[#allocation3] sm:$0xff] %v104_v23 }
 0x1af   :  { %117 = dma.vmem_to_hbm [thread:$0]  %s113_s1, 128, %s115_s15, [#allocation4]  }
 0x1b0   :  { %166 = dma.done.wait [#allocation4], 128  }
 0x1b1   :  { %167 = vsyncadd [#allocation4], 4294967168 }
 0x1b2   :  { %122 = vsyncpa [#allocation4], 1 }

</bundles_post_ra>
